<compile_context>
chip_gen: v5e
topology: v5e:2x2
jax: 0.10.0
libtpu: 0.0.40
codegen_flags: <defaults>
</compile_context>

<pallas_src>
import jax
import jax.numpy as jnp
from jax import lax
from jax.experimental import pallas as pl
from jax.experimental.pallas import tpu as pltpu

block_size = 256   # causal mask capacity (only T <= block_size is used)
n_embed = 480


def _head_kernel(x_ref, w_ref, o_ref, k_s, q_s, v_s):
    # x_ref: (bb, T, C) f32
    # w_ref: (C, 3H) bf16, columns = [K | Q * C**-0.5 | V]
    # o_ref: (bb, TQ, H) f32
    # k_s/q_s/v_s: (bb*T, H) bf16 VMEM scratch, filled at qi == 0, reused across qi
    qi = pl.program_id(1)
    bb, TQ, H = o_ref.shape
    T = k_s.shape[0] // bb
    TK = TQ  # KV tile == query tile  =>  causal tiles needed for tile qi is qi + 1

    # Fused QKV projection, once per batch block (qi axis is "arbitrary" =>
    # sequential, so scratch persists across the query-tile axis).
    @pl.when(qi == 0)
    def _():
        C = x_ref.shape[-1]
        x2d = x_ref[...].astype(jnp.bfloat16).reshape(bb * T, C)
        kqv = jnp.dot(x2d, w_ref[...],
                      preferred_element_type=jnp.float32)          # (bb*T, 3H) f32
        k_s[...] = kqv[:, 0:H].astype(jnp.bfloat16)
        q_s[...] = kqv[:, H:2 * H].astype(jnp.bfloat16)            # pre-scaled
        v_s[...] = kqv[:, 2 * H:3 * H].astype(jnp.bfloat16)

    neg = jnp.float32(-1e30)  # large finite (no NaN even on an all-masked row)
    q_off = qi * TQ
    # Broadcast-shaped iotas: only the (TQ, TK) compare result is ever live.
    row = q_off + lax.broadcasted_iota(jnp.int32, (TQ, 1), 0)

    for b in range(bb):  # bb is small and static; each row ends with its own store
        q_start = pl.multiple_of(b * T + q_off, TQ)
        q_blk = q_s[pl.ds(q_start, TQ), :]                          # (TQ, H) bf16

        def kv_step(kv, carry):
            m, l, acc = carry
            k_start = pl.multiple_of(b * T + kv * TK, TK)
            k_t = k_s[pl.ds(k_start, TK), :]                        # (TK, H) bf16
            v_t = v_s[pl.ds(k_start, TK), :]
            # scores: contract the head dim directly (no k transpose)
            s = lax.dot_general(q_blk, k_t,
                                dimension_numbers=(((1,), (1,)), ((), ())),
                                preferred_element_type=jnp.float32)  # (TQ, TK) f32
            col = kv * TK + lax.broadcasted_iota(jnp.int32, (1, TK), 1)
            s = jnp.where(row >= col, s, neg)   # no-op for strictly-past KV tiles
            # online softmax update
            m_new = jnp.maximum(m, jnp.max(s, axis=-1, keepdims=True))
            alpha = jnp.exp(m - m_new)
            p = jnp.exp(s - m_new)
            l_new = alpha * l + jnp.sum(p, axis=-1, keepdims=True)
            acc_new = alpha * acc + jnp.dot(p.astype(jnp.bfloat16), v_t,
                                            preferred_element_type=jnp.float32)
            return m_new, l_new, acc_new

        init = (jnp.full((TQ, 1), neg, dtype=jnp.float32),
                jnp.zeros((TQ, 1), dtype=jnp.float32),
                jnp.zeros((TQ, H), dtype=jnp.float32))
        # Causality: only KV tiles [0, qi] are visited.
        m, l, acc = lax.fori_loop(0, qi + 1, kv_step, init)

        out = acc * pl.reciprocal(l, approx=True)   # EUP slot, ~free
        o_ref[b] = out.astype(o_ref.dtype)


def _pick_q_tile(T):
    """Largest query tile <= 128 that is a multiple of 8 and divides T."""
    if T <= 128:
        return T
    divisors = [d for d in range(8, 129, 8) if T % d == 0]
    return max(divisors) if divisors else T


def _pick_batch_block(B):
    """Batch rows per grid step (amortizes per-step overhead); must divide B."""
    for d in (4, 3, 2):
        if B % d == 0:
            return d
    return 1


def prep_qkv_weight(w_key, w_query, w_value):
    """Fold 1/sqrt(C) into the query weight, fuse K/Q/V into one (C, 3H) bf16
    operand. Call ONCE at parameter-prep time (hoisted out of the forward)."""
    C = w_key.shape[0]
    return jnp.concatenate(
        [w_key, w_query * (C ** -0.5), w_value], axis=1).astype(jnp.bfloat16)


def head_forward(x, w_qkv):
    """x: (B, T, C) f32; w_qkv: (C, 3H) bf16 from prep_qkv_weight -> (B, T, H) f32."""
    B, T, C = x.shape
    H = w_qkv.shape[1] // 3
    tq = _pick_q_tile(T)
    nq = T // tq
    bb = _pick_batch_block(B)

    return pl.pallas_call(
        _head_kernel,
        out_shape=jax.ShapeDtypeStruct((B, T, H), jnp.float32),
        grid_spec=pltpu.PrefetchScalarGridSpec(
            num_scalar_prefetch=0,
            grid=(B // bb, nq),
            in_specs=[
                # x block is revisited across qi -> DMA'd once per batch block
                pl.BlockSpec((bb, T, C), lambda b, qi: (b, 0, 0)),
                pl.BlockSpec((C, 3 * H), lambda b, qi: (0, 0)),
            ],
            out_specs=pl.BlockSpec((bb, tq, H), lambda b, qi: (b, qi, 0)),
            scratch_shapes=[
                pltpu.VMEM((bb * T, H), jnp.bfloat16),   # k
                pltpu.VMEM((bb * T, H), jnp.bfloat16),   # q (pre-scaled)
                pltpu.VMEM((bb * T, H), jnp.bfloat16),   # v
            ],
        ),
        compiler_params=pltpu.CompilerParams(
            dimension_semantics=("parallel", "arbitrary")),
    )(x, w_qkv)


def head_forward_ref(x, w_key, w_query, w_value):
    """Pure-JAX f32 reference matching the PyTorch forward semantics."""
    B, T, C = x.shape
    k = x @ w_key
    q = x @ w_query
    v = x @ w_value
    wei = (q @ jnp.swapaxes(k, -2, -1)) * (C ** -0.5)
    tril = jnp.tril(jnp.ones((T, T), dtype=bool))
    wei = jnp.where(tril, wei, -jnp.inf)
    wei = jax.nn.softmax(wei, axis=-1)
    return wei @ v


def _check(B, T, head_size, key):
    kx, kk, kq, kv = jax.random.split(key, 4)
    x = jax.random.normal(kx, (B, T, n_embed), dtype=jnp.float32)
    w_key = jax.random.normal(kk, (n_embed, head_size), dtype=jnp.float32) * 0.02
    w_query = jax.random.normal(kq, (n_embed, head_size), dtype=jnp.float32) * 0.02
    w_value = jax.random.normal(kv, (n_embed, head_size), dtype=jnp.float32) * 0.02

    w_qkv = prep_qkv_weight(w_key, w_query, w_value)   # parameter-prep time
    out = jax.block_until_ready(head_forward(x, w_qkv))
    ref = head_forward_ref(x, w_key, w_query, w_value)
    assert out.shape == (B, T, head_size)
    # bf16 MXU operands + approx reciprocal -> relaxed tolerance vs f32 reference
    max_err = float(jnp.max(jnp.abs(out - ref)))
    assert jnp.allclose(out, ref, atol=2e-2, rtol=2e-2), (
        f"mismatch vs reference at T={T}: max abs err {max_err}")


if __name__ == "__main__":
    key = jax.random.PRNGKey(0)
    head_size = 32

    # small spec shape (B=2, T=8): single query tile, single KV tile
    _check(B=2, T=8, head_size=head_size, key=key)
    # full block_size path: query-tiled grid, causal-K flash loop, scratch reuse
    _check(B=2, T=block_size, head_size=head_size, key=key)

    print("KERNEL_OK")
</pallas_src>

<mosaic_0001>
module attributes {stable_mosaic.version = 11 : i64} {
  func.func @_head_kernel(%arg0: i32, %arg1: i32, %arg2: memref<2x8x480xf32, #tpu.memory_space<vmem>>, %arg3: memref<480x96xbf16, #tpu.memory_space<vmem>>, %arg4: memref<2x8x32xf32, #tpu.memory_space<vmem>>, %arg5: memref<16x32xbf16, #tpu.memory_space<vmem>>, %arg6: memref<16x32xbf16, #tpu.memory_space<vmem>>, %arg7: memref<16x32xbf16, #tpu.memory_space<vmem>>) attributes {dimension_semantics = [#tpu.dimension_semantics<parallel>, #tpu.dimension_semantics<arbitrary>], iteration_bounds = array<i64: 1, 1>, scalar_prefetch = 0 : i64, scratch_operands = 3 : i64, tpu.core_type = #tpu.core_type<tc>, window_params = [{transform_indices = @transform_0, window_bounds = array<i64: 2, 8, 480>}, {pipeline_mode = #tpu.pipeline_mode<synchronous>, transform_indices = @transform_1, window_bounds = array<i64: 480, 96>}, {transform_indices = @transform_2, window_bounds = array<i64: 2, 8, 32>}]} {
    %c0_i32 = arith.constant 0 : i32
    %0 = arith.cmpi eq, %arg1, %c0_i32 : i32
    %1 = arith.extui %0 : i1 to i32
    %c0_i32_0 = arith.constant 0 : i32
    %2 = arith.cmpi ne, %1, %c0_i32_0 : i32
    scf.if %2 {
      %c0_21 = arith.constant 0 : index
      %c0_22 = arith.constant 0 : index
      %c0_23 = arith.constant 0 : index
      %41 = vector.load %arg2[%c0_21, %c0_22, %c0_23] : memref<2x8x480xf32, #tpu.memory_space<vmem>>, vector<2x8x480xf32>
      %42 = arith.truncf %41 : vector<2x8x480xf32> to vector<2x8x480xbf16>
      %43 = vector.shape_cast %42 : vector<2x8x480xbf16> to vector<16x480xbf16>
      %c0_24 = arith.constant 0 : index
      %c0_25 = arith.constant 0 : index
      %44 = vector.load %arg3[%c0_24, %c0_25] : memref<480x96xbf16, #tpu.memory_space<vmem>>, vector<480x96xbf16>
      %cst_26 = arith.constant dense<0.000000e+00> : vector<16x96xf32>
      %45 = tpu.matmul %43, %44, %cst_26 {dimension_numbers = #tpu.dot_dimension_numbers<[1], [0], [0], [1], [0, 0, 1, 1], [], []>} : vector<16x480xbf16>, vector<480x96xbf16>, vector<16x96xf32> -> vector<16x96xf32>
      %46 = vector.extract_strided_slice %45 {offsets = [0, 0], sizes = [16, 32], strides = [1, 1]} : vector<16x96xf32> to vector<16x32xf32>
      %47 = arith.truncf %46 : vector<16x32xf32> to vector<16x32xbf16>
      %c0_27 = arith.constant 0 : index
      %c0_28 = arith.constant 0 : index
      %48 = vector.load %arg5[%c0_27, %c0_28] : memref<16x32xbf16, #tpu.memory_space<vmem>>, vector<16x32xbf16>
      tpu.vector_store %arg5[%c0_27, %c0_28], %47 {strides = array<i32>} : memref<16x32xbf16, #tpu.memory_space<vmem>>, vector<16x32xbf16>,
      %49 = vector.extract_strided_slice %45 {offsets = [0, 32], sizes = [16, 32], strides = [1, 1]} : vector<16x96xf32> to vector<16x32xf32>
      %50 = arith.truncf %49 : vector<16x32xf32> to vector<16x32xbf16>
      %c0_29 = arith.constant 0 : index
      %c0_30 = arith.constant 0 : index
      %51 = vector.load %arg6[%c0_29, %c0_30] : memref<16x32xbf16, #tpu.memory_space<vmem>>, vector<16x32xbf16>
      tpu.vector_store %arg6[%c0_29, %c0_30], %50 {strides = array<i32>} : memref<16x32xbf16, #tpu.memory_space<vmem>>, vector<16x32xbf16>,
      %52 = vector.extract_strided_slice %45 {offsets = [0, 64], sizes = [16, 32], strides = [1, 1]} : vector<16x96xf32> to vector<16x32xf32>
      %53 = arith.truncf %52 : vector<16x32xf32> to vector<16x32xbf16>
      %c0_31 = arith.constant 0 : index
      %c0_32 = arith.constant 0 : index
      %54 = vector.load %arg7[%c0_31, %c0_32] : memref<16x32xbf16, #tpu.memory_space<vmem>>, vector<16x32xbf16>
      tpu.vector_store %arg7[%c0_31, %c0_32], %53 {strides = array<i32>} : memref<16x32xbf16, #tpu.memory_space<vmem>>, vector<16x32xbf16>,
    } else {
    }
    %c8_i32 = arith.constant 8 : i32
    %3 = arith.muli %arg1, %c8_i32 : i32
    %4 = tpu.iota {dimensions = array<i32: 0>} : vector<8x1xi32>
    %5 = vector.broadcast %3 : i32 to vector<8x1xi32>
    %6 = arith.addi %5, %4 : vector<8x1xi32>
    %c0_i32_1 = arith.constant 0 : i32
    %7 = arith.addi %c0_i32_1, %3 : i32
    %8 = tpu.assume_multiple %7, 8 : i32
    %9 = arith.index_cast %8 : i32 to index
    %c0 = arith.constant 0 : index
    %10 = vector.load %arg6[%9, %c0] : memref<16x32xbf16, #tpu.memory_space<vmem>>, vector<8x32xbf16>
    %cst = arith.constant -1.000000e+30 : f32
    %11 = vector.broadcast %cst : f32 to vector<8x1xf32>
    %cst_2 = arith.constant 0.000000e+00 : f32
    %12 = vector.broadcast %cst_2 : f32 to vector<8x1xf32>
    %cst_3 = arith.constant 0.000000e+00 : f32
    %13 = vector.broadcast %cst_3 : f32 to vector<8x32xf32>
    %c1_i32 = arith.constant 1 : i32
    %14 = arith.addi %arg1, %c1_i32 : i32
    %cst_4 = arith.constant -1.000000e+30 : f32
    %c0_i32_5 = arith.constant 0 : i32
    %15 = arith.subi %14, %c0_i32_5 : i32
    %16 = arith.addi %c0_i32_5, %15 : i32
    %c1_i32_6 = arith.constant 1 : i32
    %17:3 = scf.for %arg8 = %c0_i32_5 to %16 step %c1_i32_6 iter_args(%arg9 = %11, %arg10 = %12, %arg11 = %13) -> (vector<8x1xf32>, vector<8x1xf32>, vector<8x32xf32>)  : i32 {
      %c8_i32_21 = arith.constant 8 : i32
      %41 = arith.muli %arg8, %c8_i32_21 : i32
      %c0_i32_22 = arith.constant 0 : i32
      %42 = arith.addi %c0_i32_22, %41 : i32
      %43 = tpu.assume_multiple %42, 8 : i32
      %44 = arith.index_cast %43 : i32 to index
      %c0_23 = arith.constant 0 : index
      %45 = vector.load %arg5[%44, %c0_23] : memref<16x32xbf16, #tpu.memory_space<vmem>>, vector<8x32xbf16>
      %46 = arith.index_cast %43 : i32 to index
      %c0_24 = arith.constant 0 : index
      %47 = vector.load %arg7[%46, %c0_24] : memref<16x32xbf16, #tpu.memory_space<vmem>>, vector<8x32xbf16>
      %cst_25 = arith.constant dense<0.000000e+00> : vector<8x8xf32>
      %48 = tpu.matmul %10, %45, %cst_25 {dimension_numbers = #tpu.dot_dimension_numbers<[1], [1], [0], [0], [0, 0, 1, 0], [], []>} : vector<8x32xbf16>, vector<8x32xbf16>, vector<8x8xf32> -> vector<8x8xf32>
      %c8_i32_26 = arith.constant 8 : i32
      %49 = arith.muli %arg8, %c8_i32_26 : i32
      %50 = tpu.iota {dimensions = array<i32: 1>} : vector<1x8xi32>
      %51 = vector.broadcast %49 : i32 to vector<1x8xi32>
      %52 = arith.addi %51, %50 : vector<1x8xi32>
      %53 = vector.broadcast %6 : vector<8x1xi32> to vector<8x8xi32>
      %54 = vector.broadcast %52 : vector<1x8xi32> to vector<8x8xi32>
      %55 = arith.cmpi sge, %53, %54 : vector<8x8xi32>
      %56 = vector.broadcast %cst_4 : f32 to vector<8x8xf32>
      %57 = arith.select %55, %48, %56 : vector<8x8xi1>, vector<8x8xf32>
      %cst_27 = arith.constant dense<0xFF800000> : vector<8xf32>
      %58 = vector.multi_reduction <maximumf>, %57, %cst_27 [1] : vector<8x8xf32> to vector<8xf32>
      %59 = vector.shape_cast %58 : vector<8xf32> to vector<8x1xf32>
      %60 = arith.maximumf %arg9, %59 : vector<8x1xf32>
      %61 = arith.subf %arg9, %60 : vector<8x1xf32>
      %62 = math.exp %61 : vector<8x1xf32>
      %63 = vector.broadcast %60 : vector<8x1xf32> to vector<8x8xf32>
      %64 = arith.subf %57, %63 : vector<8x8xf32>
      %65 = math.exp %64 : vector<8x8xf32>
      %66 = arith.mulf %62, %arg10 : vector<8x1xf32>
      %cst_28 = arith.constant dense<0.000000e+00> : vector<8xf32>
      %67 = vector.multi_reduction <add>, %65, %cst_28 [1] : vector<8x8xf32> to vector<8xf32>
      %68 = vector.shape_cast %67 : vector<8xf32> to vector<8x1xf32>
      %69 = arith.addf %66, %68 : vector<8x1xf32>
      %70 = vector.broadcast %62 : vector<8x1xf32> to vector<8x32xf32>
      %71 = arith.mulf %70, %arg11 : vector<8x32xf32>
      %72 = arith.truncf %65 : vector<8x8xf32> to vector<8x8xbf16>
      %cst_29 = arith.constant dense<0.000000e+00> : vector<8x32xf32>
      %73 = tpu.matmul %72, %47, %cst_29 {dimension_numbers = #tpu.dot_dimension_numbers<[1], [0], [0], [1], [0, 0, 1, 1], [], []>} : vector<8x8xbf16>, vector<8x32xbf16>, vector<8x32xf32> -> vector<8x32xf32>
      %74 = arith.addf %71, %73 : vector<8x32xf32>
      scf.yield %60, %69, %74 : vector<8x1xf32>, vector<8x1xf32>, vector<8x32xf32>
    }
    %18 = tpu.reciprocal %17#1 {approx = true} : vector<8x1xf32> -> vector<8x1xf32>
    %19 = vector.broadcast %18 : vector<8x1xf32> to vector<8x32xf32>
    %20 = arith.mulf %17#2, %19 : vector<8x32xf32>
    %c0_7 = arith.constant 0 : index
    %c0_8 = arith.constant 0 : index
    %c0_9 = arith.constant 0 : index
    %21 = vector.load %arg4[%c0_7, %c0_8, %c0_9] : memref<2x8x32xf32, #tpu.memory_space<vmem>>, vector<1x8x32xf32>
    %22 = vector.shape_cast %21 : vector<1x8x32xf32> to vector<8x32xf32>
    %23 = vector.shape_cast %20 : vector<8x32xf32> to vector<1x8x32xf32>
    tpu.vector_store %arg4[%c0_7, %c0_8, %c0_9], %23 {strides = array<i32>} : memref<2x8x32xf32, #tpu.memory_space<vmem>>, vector<1x8x32xf32>,
    %c8_i32_10 = arith.constant 8 : i32
    %24 = arith.addi %c8_i32_10, %3 : i32
    %25 = tpu.assume_multiple %24, 8 : i32
    %26 = arith.index_cast %25 : i32 to index
    %c0_11 = arith.constant 0 : index
    %27 = vector.load %arg6[%26, %c0_11] : memref<16x32xbf16, #tpu.memory_space<vmem>>, vector<8x32xbf16>
    %cst_12 = arith.constant -1.000000e+30 : f32
    %28 = vector.broadcast %cst_12 : f32 to vector<8x1xf32>
    %cst_13 = arith.constant 0.000000e+00 : f32
    %29 = vector.broadcast %cst_13 : f32 to vector<8x1xf32>
    %cst_14 = arith.constant 0.000000e+00 : f32
    %30 = vector.broadcast %cst_14 : f32 to vector<8x32xf32>
    %c1_i32_15 = arith.constant 1 : i32
    %31 = arith.addi %arg1, %c1_i32_15 : i32
    %cst_16 = arith.constant -1.000000e+30 : f32
    %c0_i32_17 = arith.constant 0 : i32
    %32 = arith.subi %31, %c0_i32_17 : i32
    %33 = arith.addi %c0_i32_17, %32 : i32
    %c1_i32_18 = arith.constant 1 : i32
    %34:3 = scf.for %arg8 = %c0_i32_17 to %33 step %c1_i32_18 iter_args(%arg9 = %28, %arg10 = %29, %arg11 = %30) -> (vector<8x1xf32>, vector<8x1xf32>, vector<8x32xf32>)  : i32 {
      %c8_i32_21 = arith.constant 8 : i32
      %41 = arith.muli %arg8, %c8_i32_21 : i32
      %c8_i32_22 = arith.constant 8 : i32
      %42 = arith.addi %c8_i32_22, %41 : i32
      %43 = tpu.assume_multiple %42, 8 : i32
      %44 = arith.index_cast %43 : i32 to index
      %c0_23 = arith.constant 0 : index
      %45 = vector.load %arg5[%44, %c0_23] : memref<16x32xbf16, #tpu.memory_space<vmem>>, vector<8x32xbf16>
      %46 = arith.index_cast %43 : i32 to index
      %c0_24 = arith.constant 0 : index
      %47 = vector.load %arg7[%46, %c0_24] : memref<16x32xbf16, #tpu.memory_space<vmem>>, vector<8x32xbf16>
      %cst_25 = arith.constant dense<0.000000e+00> : vector<8x8xf32>
      %48 = tpu.matmul %27, %45, %cst_25 {dimension_numbers = #tpu.dot_dimension_numbers<[1], [1], [0], [0], [0, 0, 1, 0], [], []>} : vector<8x32xbf16>, vector<8x32xbf16>, vector<8x8xf32> -> vector<8x8xf32>
      %c8_i32_26 = arith.constant 8 : i32
      %49 = arith.muli %arg8, %c8_i32_26 : i32
      %50 = tpu.iota {dimensions = array<i32: 1>} : vector<1x8xi32>
      %51 = vector.broadcast %49 : i32 to vector<1x8xi32>
      %52 = arith.addi %51, %50 : vector<1x8xi32>
      %53 = vector.broadcast %6 : vector<8x1xi32> to vector<8x8xi32>
      %54 = vector.broadcast %52 : vector<1x8xi32> to vector<8x8xi32>
      %55 = arith.cmpi sge, %53, %54 : vector<8x8xi32>
      %56 = vector.broadcast %cst_16 : f32 to vector<8x8xf32>
      %57 = arith.select %55, %48, %56 : vector<8x8xi1>, vector<8x8xf32>
      %cst_27 = arith.constant dense<0xFF800000> : vector<8xf32>
      %58 = vector.multi_reduction <maximumf>, %57, %cst_27 [1] : vector<8x8xf32> to vector<8xf32>
      %59 = vector.shape_cast %58 : vector<8xf32> to vector<8x1xf32>
      %60 = arith.maximumf %arg9, %59 : vector<8x1xf32>
      %61 = arith.subf %arg9, %60 : vector<8x1xf32>
      %62 = math.exp %61 : vector<8x1xf32>
      %63 = vector.broadcast %60 : vector<8x1xf32> to vector<8x8xf32>
      %64 = arith.subf %57, %63 : vector<8x8xf32>
      %65 = math.exp %64 : vector<8x8xf32>
      %66 = arith.mulf %62, %arg10 : vector<8x1xf32>
      %cst_28 = arith.constant dense<0.000000e+00> : vector<8xf32>
      %67 = vector.multi_reduction <add>, %65, %cst_28 [1] : vector<8x8xf32> to vector<8xf32>
      %68 = vector.shape_cast %67 : vector<8xf32> to vector<8x1xf32>
      %69 = arith.addf %66, %68 : vector<8x1xf32>
      %70 = vector.broadcast %62 : vector<8x1xf32> to vector<8x32xf32>
      %71 = arith.mulf %70, %arg11 : vector<8x32xf32>
      %72 = arith.truncf %65 : vector<8x8xf32> to vector<8x8xbf16>
      %cst_29 = arith.constant dense<0.000000e+00> : vector<8x32xf32>
      %73 = tpu.matmul %72, %47, %cst_29 {dimension_numbers = #tpu.dot_dimension_numbers<[1], [0], [0], [1], [0, 0, 1, 1], [], []>} : vector<8x8xbf16>, vector<8x32xbf16>, vector<8x32xf32> -> vector<8x32xf32>
      %74 = arith.addf %71, %73 : vector<8x32xf32>
      scf.yield %60, %69, %74 : vector<8x1xf32>, vector<8x1xf32>, vector<8x32xf32>
    }
    %35 = tpu.reciprocal %34#1 {approx = true} : vector<8x1xf32> -> vector<8x1xf32>
    %36 = vector.broadcast %35 : vector<8x1xf32> to vector<8x32xf32>
    %37 = arith.mulf %34#2, %36 : vector<8x32xf32>
    %c1 = arith.constant 1 : index
    %c0_19 = arith.constant 0 : index
    %c0_20 = arith.constant 0 : index
    %38 = vector.load %arg4[%c1, %c0_19, %c0_20] : memref<2x8x32xf32, #tpu.memory_space<vmem>>, vector<1x8x32xf32>
    %39 = vector.shape_cast %38 : vector<1x8x32xf32> to vector<8x32xf32>
    %40 = vector.shape_cast %37 : vector<8x32xf32> to vector<1x8x32xf32>
    tpu.vector_store %arg4[%c1, %c0_19, %c0_20], %40 {strides = array<i32>} : memref<2x8x32xf32, #tpu.memory_space<vmem>>, vector<1x8x32xf32>,
    return
  }
  func.func @transform_0(%arg0: i32, %arg1: i32) -> (i32, i32, i32) {
    %c0_i32 = arith.constant 0 : i32
    %c0_i32_0 = arith.constant 0 : i32
    %c0_i32_1 = arith.constant 0 : i32
    return %arg0, %c0_i32, %c0_i32_0 : i32, i32, i32
  }
  func.func @transform_1(%arg0: i32, %arg1: i32) -> (i32, i32) {
    %c0_i32 = arith.constant 0 : i32
    %c0_i32_0 = arith.constant 0 : i32
    %c0_i32_1 = arith.constant 0 : i32
    return %c0_i32, %c0_i32_0 : i32, i32
  }
  func.func @transform_2(%arg0: i32, %arg1: i32) -> (i32, i32, i32) {
    %c0_i32 = arith.constant 0 : i32
    %c0_i32_0 = arith.constant 0 : i32
    return %arg0, %arg1, %c0_i32 : i32, i32, i32
  }
}

</mosaic_0001>

<bundles_post_ra>
// kernel: tpu_custom_call.1
= control target key start
LH: loop header
LB: loop body
LE: loop exit
PB: predicated region body
PF: predicated region fallthrough
CT: control target
= control target key end

     0   :  { %7 = vsyncpa [#allocation6], 0  ;;  %vm288_vm0 = vcmask 785408   ;;  %vm350_vm1 = vcmask 257024   ;;  %s953_s28 = smov 96   ;;  %s1097_s29 = smov 0   ;;  %s1143_s0 = inlined_call_operand.vmem [shape: f32[2,8,480], index: 0, kind: input, shape index: {}]   ;;  %s1144_s1 = inlined_call_operand.vmem [shape: bf16[480,96], index: 1, kind: input, shape index: {}]   ;;  %s1145_s2 = inlined_call_operand.hbm [shape: f32[2,8,32], index: 2, kind: output, shape index: {}]  }
   0x1   :  { %v758_v0 = vld [vmem:[%s1144_s1 + $0x38] sm:$0xff]  ;;  %v780_v3 = vld [vmem:[%s1144_s1 + $0xe8] sm:$0xff]  ;;  %v757_v4 = vld [vmem:[%s1144_s1 + $0x30] sm:$0xff] }
   0x2   :  { %v766_v1 = vld [vmem:[%s1144_s1 + $0x78] sm:$0xff]  ;;  %292 = vmatpush.bf16.msra.mxu0 %v758_v0  ;;  %v765_v5 = vld [vmem:[%s1144_s1 + $0x70] sm:$0xff]  ;;  %336 = vmatpush.bf16.msra.mxu3 %v780_v3  ;;  %v779_v7 = vld [vmem:[%s1144_s1 + $0xe0] sm:$0xff] }
   0x3   :  { %v774_v2 = vld [vmem:[%s1144_s1 + $0xb8] sm:$0xff]  ;;  %306 = vmatpush.bf16.msra.mxu1 %v766_v1  ;;  %v773_v6 = vld [vmem:[%s1144_s1 + $0xb0] sm:$0xff]  ;;  %v756_v8 = vld [vmem:[%s1144_s1 + $0x28] sm:$0xff] }
   0x4   :  { %320 = vmatpush.bf16.msra.mxu2 %v774_v2  ;;  %v764_v9 = vld [vmem:[%s1144_s1 + $0x68] sm:$0xff]  ;;  %v778_v11 = vld [vmem:[%s1144_s1 + $0xd8] sm:$0xff]  ;;  %v755_v12 = vld [vmem:[%s1144_s1 + $0x20] sm:$0xff] }
   0x5   :  { %v772_v10 = vld [vmem:[%s1144_s1 + $0xa8] sm:$0xff]  ;;  %v763_v13 = vld [vmem:[%s1144_s1 + $0x60] sm:$0xff]  ;;  %v777_v15 = vld [vmem:[%s1144_s1 + $0xd0] sm:$0xff] }
   0x6   :  { %293 = vmatpush.bf16.msra.mxu0 %v757_v4  ;;  %337 = vmatpush.bf16.msra.mxu3 %v779_v7  ;;  %v771_v14 = vld [vmem:[%s1144_s1 + $0xa0] sm:$0xff]  ;;  %v19_v16 = vld [vmem:[%s1143_s0 + $0x10] sm:$0xff]  ;;  %v20_v17 = vld [vmem:[%s1143_s0 + $0x18] sm:$0xff] }
   0x7   :  { %307 = vmatpush.bf16.msra.mxu1 %v765_v5  ;;  %v23_v18 = vld [vmem:[%s1143_s0 + $0x30] sm:$0xff]  ;;  %v24_v19 = vld [vmem:[%s1143_s0 + $0x38] sm:$0xff]  ;;  %v776_v23 = vld [vmem:[%s1144_s1 + $0xc8] sm:$0xff]  ;;  %v26_v24 = vpack.c.bf16 %v20_v17, %v19_v16 }
   0x8   :  { %321 = vmatpush.bf16.msra.mxu2 %v773_v6  ;;  %v754_v20 = vld [vmem:[%s1144_s1 + $0x18] sm:$0xff]  ;;  %v28_v25 = vpack.c.bf16 %v24_v19, %v23_v18  ;;  %v753_v26 = vld [vmem:[%s1144_s1 + $0x10] sm:$0xff]  ;;  %v17_v28 = vld [vmem:[%s1143_s0] sm:$0xff]  ;;  %v372_v6 = vlaneseq }
   0x9   :  { %v762_v21 = vld [vmem:[%s1144_s1 + $0x58] sm:$0xff]  ;;  %v761_v27 = vld [vmem:[%s1144_s1 + $0x50] sm:$0xff]  ;;  %v18_v29 = vld [vmem:[%s1143_s0 + $0x8] sm:$0xff]  ;;  %v96_v34 = vunpack.c.h.b16 %v26_v24  ;;  %v95_v48 = vunpack.c.l.b16 %v26_v24 }
   0xa   :  { %294 = vmatpush.bf16.msra.mxu0 %v756_v8  ;;  %338 = vmatpush.bf16.msra.mxu3 %v778_v11  ;;  %v770_v22 = vld [vmem:[%s1144_s1 + $0x98] sm:$0xff]  ;;  %v21_v30 = vld [vmem:[%s1143_s0 + $0x20] sm:$0xff]  ;;  %v22_v31 = vld [vmem:[%s1143_s0 + $0x28] sm:$0xff]  ;;  %v100_v35 = vunpack.c.h.b16 %v28_v25  ;;  %v25_v36 = vpack.c.bf16 %v18_v29, %v17_v28  ;;  %v99_v49 = vunpack.c.l.b16 %v28_v25  ;;  %v1089_v7 = vshrl.u32 %v372_v6, 7 }
   0xb   :  { %308 = vmatpush.bf16.msra.mxu1 %v764_v9  ;;  %v769_v32 = vld [vmem:[%s1144_s1 + $0x90] sm:$0xff]  ;;  %v775_v33 = vld [vmem:[%s1144_s1 + $0xc0] sm:$0xff]  ;;  %v27_v37 = vpack.c.bf16 %v22_v31, %v21_v30  ;;  %v752_v38 = vld [vmem:[%s1144_s1 + $0x8] sm:$0xff] }
   0xc   :  { %322 = vmatpush.bf16.msra.mxu2 %v772_v10  ;;  %v760_v39 = vld [vmem:[%s1144_s1 + $0x48] sm:$0xff]  ;;  %v104_v41 = vpack.c.b16 %v100_v35, %v96_v34  ;;  %v93_v42 = vunpack.c.l.b16 %v25_v36  ;;  %v94_v44 = vunpack.c.h.b16 %v25_v36  ;;  %v751_v46 = vld [vmem:[%s1144_s1] sm:$0xff]  ;;  %v103_v53 = vpack.c.b16 %v99_v49, %v95_v48 }
   0xd   :  { %v768_v40 = vld [vmem:[%s1144_s1 + $0x88] sm:$0xff]  ;;  %v97_v43 = vunpack.c.l.b16 %v27_v37  ;;  %v98_v45 = vunpack.c.h.b16 %v27_v37  ;;  %v759_v47 = vld [vmem:[%s1144_s1 + $0x40] sm:$0xff] }
   0xe   :  { %295 = vmatpush.bf16.msra.mxu0 %v755_v12  ;;  %339 = vmatpush.bf16.msra.mxu3 %v777_v15  ;;  %v767_v50 = vld [vmem:[%s1144_s1 + $0x80] sm:$0xff]  ;;  %s952_s1 = smov 64   ;;  %v928_v15 = vmov -1e+30  }
   0xf   :  { %309 = vmatpush.bf16.msra.mxu1 %v763_v13  ;;  %v101_v51 = vpack.c.b16 %v97_v43, %v93_v42  ;;  %v102_v52 = vpack.c.b16 %v98_v45, %v94_v44  ;;  %v920_v13 = vmov 0.0  }
  0x10   :  { %323 = vmatpush.bf16.msra.mxu2 %v771_v14  ;;  %v924_v14 = vmov 0.0  }
  0x12   :  { %296 = vmatpush.bf16.msra.mxu0 %v754_v20  ;;  %340 = vmatpush.bf16.msra.mxu3 %v776_v23 }
  0x13   :  { %310 = vmatpush.bf16.msra.mxu1 %v762_v21 }
  0x14   :  { %324 = vmatpush.bf16.msra.mxu2 %v770_v22 }
  0x16   :  { %297 = vmatpush.bf16.msra.mxu0 %v753_v26  ;;  %341 = vmatpush.bf16.msra.mxu3 %v775_v33 }
  0x17   :  { %311 = vmatpush.bf16.msra.mxu1 %v761_v27 }
  0x18   :  { %325 = vmatpush.bf16.msra.mxu2 %v769_v32 }
  0x19   :  { %740 = vmatmul.msk.bf16.vlgmr.msra.gmra.mxu3 %vm288_vm0, %v104_v41 }
  0x1a   :  { %298 = vmatpush.bf16.msra.mxu0 %v752_v38 }
  0x1b   :  { %312 = vmatpush.bf16.msra.mxu1 %v760_v39 }
  0x1c   :  { %326 = vmatpush.bf16.msra.mxu2 %v768_v40 }
  0x1e   :  { %299 = vmatpush.bf16.msra.mxu0 %v751_v46 }
  0x1f   :  { %313 = vmatpush.bf16.msra.mxu1 %v759_v47 }
  0x20   :  { %327 = vmatpush.bf16.msra.mxu2 %v767_v50 }
  0x21   :  { %300 = vmatmul.bf16.vlgmr.msra.gmra.mxu0 %v101_v51 }
  0x22   :  { %314 = vmatmul.bf16.vlgmr.msra.gmra.mxu1 %v102_v52 }
  0x23   :  { %328 = vmatmul.bf16.vlgmr.msra.gmra.mxu2 %v103_v53 }
  0x9c   :  { %v343_v57 = vpop.f32.mrf.mxu3 }
  0x9e   :  { %v301_v54 = vpop.f32.mrf.mxu0 }
  0x9f   :  { %v315_v55 = vpop.f32.mrf.mxu1 }
  0xa0   :  { %v316_v56 = vadd.f32 %v315_v55, %v301_v54 }
  0xa4   :  { %v345_v3 = vpop.f32.mrf.mxu3 }
  0xa6   :  { %v329_v58 = vpop.f32.mrf.mxu2  ;;  %v303_v61 = vpop.f32.mrf.mxu0 }
  0xa7   :  { %v330_v59 = vadd.f32 %v329_v58, %v316_v56  ;;  %v317_v62 = vpop.f32.mrf.mxu1 }
  0xa8   :  { %v318_v0 = vadd.f32 %v317_v62, %v303_v61 }
  0xa9   :  { %v344_v60 = vadd.f32 %v343_v57, %v330_v59 }
  0xab   :  { %v348_v63 = vpack.c.bf16 %v344_v60, %v344_v60 }
  0xad   :  { %351 = vst.msk [vmem:[#allocation2] sm:$0xf] %vm350_vm1, %v348_v63  ;;  %363 = vrot.lane.b32.xlu1 %v348_v63, %s952_s1  ;;  %355 = vrot.lane.b32.xlu0 %v348_v63, %s953_s28 }
  0xae   :  { %v331_v1 = vpop.f32.mrf.mxu2 }
  0xaf   :  { %v332_v2 = vadd.f32 %v331_v1, %v318_v0 }
  0xb1   :  { %v346_v4 = vadd.f32 %v345_v3, %v332_v2 }
  0xb3   :  { %v349_v5 = vpack.c.bf16 %v346_v4, %v346_v4 }
  0xb5   :  { %352 = vst.msk [vmem:[#allocation2 + $0x4] sm:$0xf] %vm350_vm1, %v349_v5  ;;  %365 = vrot.lane.b32.xlu1 %v349_v5, %s952_s1  ;;  %357 = vrot.lane.b32.xlu0 %v349_v5, %s953_s28 }
 0x11f   :  { %v364_v8 = vpop.permute.xlu1 %363  ;;  %v356_v9 = vpop.permute.xlu0 %355 }
 0x120   :  { %369 = vst.msk [vmem:[#allocation4] sm:$0xf] %vm350_vm1, %v364_v8 }
 0x121   :  { %361 = vst.msk [vmem:[#allocation3] sm:$0xf] %vm350_vm1, %v356_v9 }
 0x127   :  { %v366_v10 = vpop.permute.xlu1 %365  ;;  %v358_v11 = vpop.permute.xlu0 %357 }
 0x128   :  { %v1093_v12 = vld [vmem:[#allocation3] sm:$0xf]  ;;  %370 = vst.msk [vmem:[#allocation4 + $0x4] sm:$0xf] %vm350_vm1, %v366_v10 }
 0x129   :  { %362 = vst.msk [vmem:[#allocation3 + $0x4] sm:$0xf] %vm350_vm1, %v358_v11 }
 0x12a LB: > { %s741_s30 = sshll.u32 %s934_s29, 3  ;;  %vm400_vm2 = vcmask 261120   ;;  %v1107_v18 = vand.u32 127, %v372_v6  ;;  %vm426_vm4 = vcmask 64512   ;;  %vm447_vm5 = vcmask 1043456   ;;  %s385_s29 = sadd.s32 1, %s934_s29   ;;  %s934_s29 = sphi %s1097_s29, %s385_s29   ;;  %v930_v15 = vphi %v928_v15, %v929_v15   ;;  %v926_v14 = vphi %v924_v14, %v925_v14   ;;  %v922_v13 = vphi %v920_v13, %v921_v13  }
 0x12b   : > { %s392_s3 = sshra.s32 %s741_s30, 3  ;;  %v422_v19 = vstv %s741_s30  ;;  %p384_p0 = scmp.ge.s32.totalorder %s385_s29, 1 }
 0x12c   : > { %s742_s4 = sshll.u32 %s392_s3, 2  ;;  %v423_v20 = vadd.s32 %v422_v19, %v1107_v18  ;;  %v936_v47 = vmov (%p384_p0), 0.0   ;;  %v940_v48 = vmov (%p384_p0), 0.0   ;;  %v944_v49 = vmov (%p384_p0), -1e+30   ;;  %s1121_s7 = smov (%p384_p0), 0  }
 0x12d   : > { %s395_s5 = scalar_lea.vmem [#allocation2], %s742_s4  ;;  %s398_s6 = scalar_lea.vmem [#allocation4], %s742_s4 }
 0x12e   : > { %v396_v16 = vld [vmem:[%s395_s5] sm:$0xf]  ;;  %vm424_vm3 = vcmp.ge.s32.totalorder %v1089_v7, %v423_v20 }
 0x12f   : > { %v405_v17 = vsel %vm400_vm2, %v396_v16, 0  ;;  %v399_v25 = vld [vmem:[%s398_s6] sm:$0xf] }
 0x130   : > { %414 = vmatpush.bf16.xpose.msra.mxu0 %v405_v17  ;;  %v449_v26 = vsel %vm447_vm5, %v399_v25, 0  ;;  %v1118_v44 = vld [vmem:[#allocation3 + $0x4] sm:$0xf] (%p384_p0) }
 0x131   : > { %458 = vmatpush.bf16.msra.mxu1 %v449_v26 }
 0x137   : > { %744 = vmatmul.msk.bf16.vlgmr.msra.gmra.mxu0 %vm400_vm2, %v1093_v12 }
 0x1b4   : > { %v416_v21 = vpop.f32.mrf.mxu0 }
 0x1b5   : > { %v425_v22 = vsel %vm424_vm3, %v416_v21, -1e+30 }
 0x1b6   : > { %v427_v23 = vsel %vm426_vm4, %v425_v22, -inf }
 0x1b7   : > { %428 = vmax.xlane.f32.xlu0 %v427_v23 }
 0x1bc   : > { %v418_v24 = vpop.f32.mrf.mxu0 }
 0x22a   : > { %v429_v27 = vpop.xlane.xlu0 %428 }
 0x22b   : > { %v430_v28 = vmax.f32 %v930_v15, %v429_v27  }
 0x22d   : > { %v431_v29 = vsub.f32 %v930_v15, %v430_v28  ;;  %v434_v30 = vsub.f32 %v425_v22, %v430_v28  ;;  %v929_v15 = vmov %v430_v28  }
 0x22f   : > { %v435_v31 = vmul.f32 1.442695, %v434_v30  ;;  %v432_v35 = vmul.f32 1.442695, %v431_v29 }
 0x231   : > { %850 = vpow2.f32 %v435_v31 }
 0x232   : > { %852 = vpow2.f32 %v432_v35 }
 0x237   : > { %v851_v32 = vpop.eup %850 }
 0x238   : > { %v438_v33 = vsel %vm426_vm4, %v851_v32, 0.0  ;;  %v443_v34 = vpack.c.bf16 %v851_v32, %v851_v32  ;;  %v853_v36 = vpop.eup %852 }
 0x239   : > { %439 = vadd.xlane.f32.xlu0 %v438_v33  ;;  %v437_v37 = vmul.f32 %v926_v14, %v853_v36  ;;  %v442_v40 = vmul.f32 %v922_v13, %v853_v36 }
 0x23a   : > { %745 = vmatmul.msk.bf16.vlgmr.msra.gmra.mxu1 %vm426_vm4, %v443_v34 }
 0x2ac   : > { %v440_v38 = vpop.xlane.xlu0 %439 }
 0x2ad   : > { %v441_v39 = vadd.f32 %v440_v38, %v437_v37  }
 0x2af   : > { %v925_v14 = vmov %v441_v39   ;;  %854 = vrcp.f32 (%p384_p0), %v441_v39 }
 0x2b5   :  { %v855_v45 = vpop.eup (%p384_p0), %854 }
 0x2b7   : > { %v460_v41 = vpop.f32.mrf.mxu1 }
 0x2b8   : > { %v464_v42 = vadd.f32 %v460_v41, %v442_v40  }
 0x2ba   : > { %v921_v13 = vmov %v464_v42   ;;  %v466_v46 = vmul.f32 (%p384_p0), %v855_v45, %v464_v42 }
 0x2bb   :  { %387 = sbr.rel (!%p384_p0) target bundleno = 298 (0x12a), region = 53 }
 0x2bc   :  { %468 = vst.msk [vmem:[#allocation5] sm:$0xff] (%p384_p0), %vm400_vm2, %v466_v46 }
 0x2bf   : > { %v462_v43 = vpop.f32.mrf.mxu1 }
 0x2c0 LB: > { %s746_s8 = sshll.u32 %s950_s7, 3  ;;  %s478_s7 = sadd.s32 1, %s950_s7   ;;  %s950_s7 = sphi %s1121_s7, %s478_s7   ;;  %v946_v49 = vphi %v944_v49, %v945_v49   ;;  %v942_v48 = vphi %v940_v48, %v941_v48   ;;  %v938_v47 = vphi %v936_v47, %v937_v47  }
 0x2c1   : > { %s485_s9 = sadd.s32 8, %s746_s8  ;;  %v515_v52 = vstv %s746_s8  ;;  %p477_p1 = scmp.ge.s32.totalorder %s478_s7, 1 }
 0x2c2   : > { %s486_s10 = sshra.s32 %s485_s9, 3  ;;  %v516_v53 = vadd.s32 %v515_v52, %v1107_v18  ;;  %s954_s14 = smov (%p477_p1), [#allocation5]  }
 0x2c3   : > { %s747_s11 = sshll.u32 %s486_s10, 2  ;;  %s566_s15 = sshll.u32 (%p477_p1), %s954_s14, 4  ;;  %s567_s15 = int_to_ptr.vmem [resolvable:$true] %s566_s15 }
 0x2c4   : > { %s489_s12 = scalar_lea.vmem [#allocation2], %s747_s11  ;;  %vm517_vm6 = vcmp.ge.s32.totalorder %v1089_v7, %v516_v53  ;;  %s492_s13 = scalar_lea.vmem [#allocation4], %s747_s11 }
 0x2c5   : > { %v490_v50 = vld [vmem:[%s489_s12] sm:$0xf]  ;;  %s568_s18 = sshll.u32 (%p477_p1), %s1145_s2, 4  ;;  %s955_s0 = smov (%p477_p1), 128   ;;  %s569_s18 = int_to_ptr.hbm [resolvable:$true] %s568_s18 }
 0x2c6   : > { %v498_v51 = vsel %vm400_vm2, %v490_v50, 0  ;;  %v493_v58 = vld [vmem:[%s492_s13] sm:$0xf]  ;;  %s956_s19 = smov (%p477_p1), 8  }
 0x2c7   : > { %507 = vmatpush.bf16.xpose.msra.mxu0 %v498_v51  ;;  %v542_v59 = vsel %vm447_vm5, %v493_v58, 0 }
 0x2c8   : > { %551 = vmatpush.bf16.msra.mxu1 %v542_v59 }
 0x2ce   : > { %749 = vmatmul.msk.bf16.vlgmr.msra.gmra.mxu0 %vm400_vm2, %v1118_v44 }
 0x34b   : > { %v509_v54 = vpop.f32.mrf.mxu0 }
 0x34c   : > { %v518_v55 = vsel %vm517_vm6, %v509_v54, -1e+30 }
 0x34d   : > { %v520_v56 = vsel %vm426_vm4, %v518_v55, -inf }
 0x34e   : > { %521 = vmax.xlane.f32.xlu0 %v520_v56 }
 0x353   : > { %v511_v57 = vpop.f32.mrf.mxu0 }
 0x3c1   : > { %v522_v60 = vpop.xlane.xlu0 %521 }
 0x3c2   : > { %v523_v61 = vmax.f32 %v946_v49, %v522_v60  }
 0x3c4   : > { %v524_v62 = vsub.f32 %v946_v49, %v523_v61  ;;  %v527_v63 = vsub.f32 %v518_v55, %v523_v61  ;;  %v945_v49 = vmov %v523_v61  }
 0x3c6   : > { %v528_v0 = vmul.f32 1.442695, %v527_v63  ;;  %v525_v4 = vmul.f32 1.442695, %v524_v62 }
 0x3c8   : > { %856 = vpow2.f32 %v528_v0 }
 0x3c9   : > { %858 = vpow2.f32 %v525_v4 }
 0x3ce   : > { %v857_v1 = vpop.eup %856 }
 0x3cf   : > { %v531_v2 = vsel %vm426_vm4, %v857_v1, 0.0  ;;  %v536_v3 = vpack.c.bf16 %v857_v1, %v857_v1  ;;  %v859_v5 = vpop.eup %858 }
 0x3d0   : > { %532 = vadd.xlane.f32.xlu0 %v531_v2  ;;  %v530_v6 = vmul.f32 %v942_v48, %v859_v5  ;;  %v535_v10 = vmul.f32 %v938_v47, %v859_v5 }
 0x3d1   : > { %750 = vmatmul.msk.bf16.vlgmr.msra.gmra.mxu1 %vm426_vm4, %v536_v3 }
 0x443   : > { %v533_v8 = vpop.xlane.xlu0 %532 }
 0x444   : > { %v534_v9 = vadd.f32 %v533_v8, %v530_v6  }
 0x446   : > { %v941_v48 = vmov %v534_v9   ;;  %860 = vrcp.f32 (%p477_p1), %v534_v9 }
 0x44c   :  { %v861_v14 = vpop.eup (%p477_p1), %860 }
 0x44e   : > { %v553_v11 = vpop.f32.mrf.mxu1 }
 0x44f   : > { %v557_v12 = vadd.f32 %v553_v11, %v535_v10  }
 0x451   : > { %v937_v47 = vmov %v557_v12   ;;  %v559_v15 = vmul.f32 (%p477_p1), %v861_v14, %v557_v12 }
 0x452   :  { %480 = sbr.rel (!%p477_p1) target bundleno = 704 (0x2c0), region = 64 }
 0x453   :  { %561 = vst.msk [vmem:[#allocation5 + $0x8] sm:$0xff] (%p477_p1), %vm400_vm2, %v559_v15 }
 0x454   :  { %574 = dma.vmem_to_hbm [thread:$0]  (%p477_p1), %s567_s15, 256, %s569_s18, [#allocation6], %s955_s0, %s955_s0, %s956_s19  }
 0x456   : > { %v555_v13 = vpop.f32.mrf.mxu1 }
 0x457   :  { %918 = dma.done.wait [#allocation6], 256  }
 0x458   :  { %919 = vsyncadd [#allocation6], 4294967040 }
 0x459   :  { %579 = vsyncpa [#allocation6], 1 }

</bundles_post_ra>
